<compile_context>
chip_gen: v7x
topology: tpu7x:2x2x1
jax: 0.10.0
libtpu: 0.0.40
codegen_flags: <defaults>
</compile_context>

<pallas_src>
import jax
import jax.numpy as jnp
from jax.experimental import pallas as pl
from jax.experimental.pallas import tpu as pltpu  # noqa: F401  (TPU backend)


def gru_linear_kernel(xf_ref, h0_ref, wih_ref, whh_ref, bgi_ref, bhn_ref,
                      wlin_ref, blin_ref, lin_ref, hN_ref):
    """Whole GRU recurrence + final Linear in one invocation.

    xf_ref  : (T*BP, I)  bf16  input, time-major rows (row t*BP+b == x[t, b])
    h0_ref  : (BP, H)    f32   initial hidden state (batch padded to BP)
    wih_ref : (I, 3H)    bf16  W_ih^T, gates (r|z|n) along lanes
    whh_ref : (H, 3H)    bf16  W_hh^T, gates (r|z|n) along lanes
    bgi_ref : (1, 3H)    f32   folded input-side biases [b_ir+b_hr | b_iz+b_hz | b_in]
    bhn_ref : (1, H)     f32   b_hn (applied inside the reset-gated term)
    wlin_ref: (H, C)     bf16  linear weight, transposed
    blin_ref: (1, C)     f32   linear bias
    lin_ref : (BP, C)    f32   output: linear(gru_out[-1])
    hN_ref  : (BP, H)    f32   output: final hidden state
    """
    TB, _ = xf_ref.shape
    BP, H = h0_ref.shape
    T = TB // BP
    H2 = 2 * H

    # ---- hoisted, fused input projection: one MXU pass for all gates -------
    gi = jnp.dot(xf_ref[...], wih_ref[...],
                 preferred_element_type=jnp.float32) + bgi_ref[...]  # (T*BP, 3H) f32

    # loop-invariant loads, done once
    w_hh = whh_ref[...]                                              # (H, 3H) bf16
    b_hn = bhn_ref[...]                                              # (1, H)  f32

    # ---- time recurrence: straight-line unrolled, h carried in vregs -------
    h = h0_ref[...]                                                  # (BP, H) f32
    for t in range(T):                     # T is static -> fully unrolled
        lo = t * BP                        # BP % 8 == 0 -> sublane-tile aligned
        gi_t = gi[lo:lo + BP]              # (BP, 3H) whole-tile static slice
        # single fused hidden matmul for all three gates (bf16 -> f32 acc)
        gh = jnp.dot(h.astype(jnp.bfloat16), w_hh,
                     preferred_element_type=jnp.float32)             # (BP, 3H)
        # one sigmoid over the concatenated r|z lanes, tanh only on n lanes
        rz = jax.nn.sigmoid(gi_t[:, :H2] + gh[:, :H2])               # (BP, 2H)
        r = rz[:, :H]
        z = rz[:, H:]
        n = jnp.tanh(gi_t[:, H2:] + r * (gh[:, H2:] + b_hn))
        h = n + z * (h - n)                # == (1-z)*n + z*h, one fewer VALU op

    # ---- outputs (written once) ---------------------------------------------
    hN_ref[...] = h
    lin_ref[...] = (jnp.dot(h.astype(jnp.bfloat16), wlin_ref[...],
                            preferred_element_type=jnp.float32)
                    + blin_ref[...])


def lstm_rnn_forward(x, hidden, params):
    """Pallas implementation of LSTM_RNN.forward (single-layer GRU + Linear).

    x      : (T, B, I) float32
    hidden : (num_layers=1, B, H) float32
    returns (linear_out (B, C), hidden (1, B, H))
    """
    # TODO(synk): args.num_layers is assumed 1 here; a multi-layer GRU would
    # chain this kernel, feeding each layer's output sequence into the next.
    T, B, I = x.shape
    H = params["w_hh_l0"].shape[1]
    C = params["w_lin"].shape[0]

    # Pad batch to a sublane multiple (8) so per-step slices of the hoisted
    # projection are whole-tile reads and vregs/MXU passes aren't mostly pad.
    BP = max(8, ((B + 7) // 8) * 8)
    pad_b = BP - B
    if pad_b:
        x = jnp.pad(x, ((0, 0), (0, pad_b), (0, 0)))
        h0 = jnp.pad(hidden[0], ((0, pad_b), (0, 0)))
    else:
        h0 = hidden[0]                                               # (BP, H)

    # PyTorch packs gates as rows [r; z; n] along the 3H axis; transposing
    # puts them contiguously along the lane (output) axis.
    w_ih_all = params["w_ih_l0"].T.astype(jnp.bfloat16)              # (I, 3H)
    w_hh_all = params["w_hh_l0"].T.astype(jnp.bfloat16)              # (H, 3H)
    b_ih = params["b_ih_l0"].reshape(3, H)
    b_hh = params["b_hh_l0"].reshape(3, H)
    # Fold biases: r,z gates use b_ih+b_hh; n gate uses b_in on the input side
    # and b_hn inside the reset-gated term.
    b_gi = jnp.concatenate(
        [b_ih[0] + b_hh[0], b_ih[1] + b_hh[1], b_ih[2]]).reshape(1, 3 * H)
    b_hn = b_hh[2].reshape(1, H)

    w_lin_t = params["w_lin"].T.astype(jnp.bfloat16)                 # (H, C)
    b_lin = params["b_lin"].reshape(1, C)

    x_flat = x.reshape(T * BP, I).astype(jnp.bfloat16)               # (T*BP, I)

    # Single invocation, no grid: every operand is a whole-array VMEM block.
    # (Total footprint ~50 KiB — far under VMEM limits on v5e/v6e/v7x.  If
    #  T/B/H ever grow, tile the hoisted projection over time chunks with a
    #  grid and a "parallel" batch axis for v7x's two TensorCores.)
    lin_p, h_p = pl.pallas_call(
        gru_linear_kernel,
        out_shape=(jax.ShapeDtypeStruct((BP, C), jnp.float32),
                   jax.ShapeDtypeStruct((BP, H), jnp.float32)),
    )(x_flat, h0, w_ih_all, w_hh_all, b_gi, b_hn, w_lin_t, b_lin)

    return lin_p[:B], h_p[None, :B, :]


def gru_linear_reference(x, hidden, params):
    """Pure-JAX f32 reference of the same forward pass (for validation)."""
    H = params["w_hh_l0"].shape[1]

    def step(h, x_t):
        gi = x_t @ params["w_ih_l0"].T + params["b_ih_l0"]
        gh = h @ params["w_hh_l0"].T + params["b_hh_l0"]
        r = jax.nn.sigmoid(gi[:, :H] + gh[:, :H])
        z = jax.nn.sigmoid(gi[:, H:2 * H] + gh[:, H:2 * H])
        n = jnp.tanh(gi[:, 2 * H:] + r * gh[:, 2 * H:])
        h_new = (1.0 - z) * n + z * h
        return h_new, h_new

    h_final, _ = jax.lax.scan(step, hidden[0], x)
    lin = h_final @ params["w_lin"].T + params["b_lin"]
    return lin, h_final[None, :, :]


if __name__ == "__main__":
    # Small, module-consistent shapes:
    #   no_classes (I and C) = 16, hidden_size = 32, num_layers = 1,
    #   seq_len = 8, batch = 2.
    T, B, I, H = 8, 2, 16, 32
    C = I  # linear maps hidden -> no_classes
    key = jax.random.PRNGKey(0)
    k = jax.random.split(key, 8)

    # Deterministic parameter init (shapes match nn.GRU / nn.Linear):
    #   linear ~ N(0, 0.075); GRU weights ~ xavier-like normal; biases small.
    xavier_ih = (2.0 / (I + 3 * H)) ** 0.5
    xavier_hh = (2.0 / (H + 3 * H)) ** 0.5
    params = {
        "w_ih_l0": jax.random.normal(k[0], (3 * H, I), jnp.float32) * xavier_ih,
        "w_hh_l0": jax.random.normal(k[1], (3 * H, H), jnp.float32) * xavier_hh,
        "b_ih_l0": jax.random.normal(k[2], (3 * H,), jnp.float32) * 0.05,
        "b_hh_l0": jax.random.normal(k[3], (3 * H,), jnp.float32) * 0.05,
        "w_lin":   jax.random.normal(k[4], (C, H), jnp.float32) * 0.075,
        "b_lin":   jax.random.normal(k[5], (C,), jnp.float32) * 0.075,
    }

    x = jax.random.normal(k[6], (T, B, I), jnp.float32)
    hidden0 = jnp.zeros((1, B, H), jnp.float32)   # init_hidden(): zeros

    lin_out, hidden = lstm_rnn_forward(x, hidden0, params)
    jax.block_until_ready((lin_out, hidden))

    lin_ref, hid_ref = gru_linear_reference(x, hidden0, params)
    assert lin_out.shape == (B, C) and hidden.shape == (1, B, H)
    # bf16 MXU operands (per perf review) -> relaxed tolerance vs f32 reference.
    assert jnp.allclose(lin_out, lin_ref, atol=2e-2, rtol=2e-2)
    assert jnp.allclose(hidden, hid_ref, atol=2e-2, rtol=2e-2)

    print("KERNEL_OK")
</pallas_src>

<mosaic_0001>
module attributes {stable_mosaic.version = 11 : i64} {
  func.func @gru_linear_kernel(%arg0: memref<64x16xbf16, #tpu.memory_space<vmem>>, %arg1: memref<8x32xf32, #tpu.memory_space<vmem>>, %arg2: memref<16x96xbf16, #tpu.memory_space<vmem>>, %arg3: memref<32x96xbf16, #tpu.memory_space<vmem>>, %arg4: memref<1x96xf32, #tpu.memory_space<vmem>>, %arg5: memref<1x32xf32, #tpu.memory_space<vmem>>, %arg6: memref<32x16xbf16, #tpu.memory_space<vmem>>, %arg7: memref<1x16xf32, #tpu.memory_space<vmem>>, %arg8: memref<8x16xf32, #tpu.memory_space<vmem>>, %arg9: memref<8x32xf32, #tpu.memory_space<vmem>>) attributes {dimension_semantics = [], scalar_prefetch = 0 : i64, scratch_operands = 0 : i64, tpu.core_type = #tpu.core_type<tc>} {
    %c0 = arith.constant 0 : index
    %c0_0 = arith.constant 0 : index
    %0 = vector.load %arg0[%c0, %c0_0] : memref<64x16xbf16, #tpu.memory_space<vmem>>, vector<64x16xbf16>
    %c0_1 = arith.constant 0 : index
    %c0_2 = arith.constant 0 : index
    %1 = vector.load %arg2[%c0_1, %c0_2] : memref<16x96xbf16, #tpu.memory_space<vmem>>, vector<16x96xbf16>
    %cst = arith.constant dense<0.000000e+00> : vector<64x96xf32>
    %2 = tpu.matmul %0, %1, %cst {dimension_numbers = #tpu.dot_dimension_numbers<[1], [0], [0], [1], [0, 0, 1, 1], [], []>} : vector<64x16xbf16>, vector<16x96xbf16>, vector<64x96xf32> -> vector<64x96xf32>
    %c0_3 = arith.constant 0 : index
    %c0_4 = arith.constant 0 : index
    %3 = vector.load %arg4[%c0_3, %c0_4] : memref<1x96xf32, #tpu.memory_space<vmem>>, vector<1x96xf32>
    %4 = vector.broadcast %3 : vector<1x96xf32> to vector<64x96xf32>
    %5 = arith.addf %2, %4 : vector<64x96xf32>
    %c0_5 = arith.constant 0 : index
    %c0_6 = arith.constant 0 : index
    %6 = vector.load %arg3[%c0_5, %c0_6] : memref<32x96xbf16, #tpu.memory_space<vmem>>, vector<32x96xbf16>
    %c0_7 = arith.constant 0 : index
    %c0_8 = arith.constant 0 : index
    %7 = vector.load %arg5[%c0_7, %c0_8] : memref<1x32xf32, #tpu.memory_space<vmem>>, vector<1x32xf32>
    %c0_9 = arith.constant 0 : index
    %c0_10 = arith.constant 0 : index
    %8 = vector.load %arg1[%c0_9, %c0_10] : memref<8x32xf32, #tpu.memory_space<vmem>>, vector<8x32xf32>
    %9 = vector.extract_strided_slice %5 {offsets = [0, 0], sizes = [8, 96], strides = [1, 1]} : vector<64x96xf32> to vector<8x96xf32>
    %10 = arith.truncf %8 : vector<8x32xf32> to vector<8x32xbf16>
    %cst_11 = arith.constant dense<0.000000e+00> : vector<8x96xf32>
    %11 = tpu.matmul %10, %6, %cst_11 {dimension_numbers = #tpu.dot_dimension_numbers<[1], [0], [0], [1], [0, 0, 1, 1], [], []>} : vector<8x32xbf16>, vector<32x96xbf16>, vector<8x96xf32> -> vector<8x96xf32>
    %12 = vector.extract_strided_slice %9 {offsets = [0, 0], sizes = [8, 64], strides = [1, 1]} : vector<8x96xf32> to vector<8x64xf32>
    %13 = vector.extract_strided_slice %11 {offsets = [0, 0], sizes = [8, 64], strides = [1, 1]} : vector<8x96xf32> to vector<8x64xf32>
    %14 = arith.addf %12, %13 : vector<8x64xf32>
    %15 = arith.negf %14 : vector<8x64xf32>
    %16 = math.exp %15 : vector<8x64xf32>
    %cst_12 = arith.constant 1.000000e+00 : f32
    %17 = vector.broadcast %cst_12 : f32 to vector<8x64xf32>
    %18 = arith.addf %17, %16 : vector<8x64xf32>
    %19 = arith.divf %17, %18 : vector<8x64xf32>
    %20 = vector.extract_strided_slice %19 {offsets = [0, 0], sizes = [8, 32], strides = [1, 1]} : vector<8x64xf32> to vector<8x32xf32>
    %21 = vector.extract_strided_slice %19 {offsets = [0, 32], sizes = [8, 32], strides = [1, 1]} : vector<8x64xf32> to vector<8x32xf32>
    %22 = vector.extract_strided_slice %9 {offsets = [0, 64], sizes = [8, 32], strides = [1, 1]} : vector<8x96xf32> to vector<8x32xf32>
    %23 = vector.extract_strided_slice %11 {offsets = [0, 64], sizes = [8, 32], strides = [1, 1]} : vector<8x96xf32> to vector<8x32xf32>
    %24 = vector.broadcast %7 : vector<1x32xf32> to vector<8x32xf32>
    %25 = arith.addf %23, %24 : vector<8x32xf32>
    %26 = arith.mulf %20, %25 : vector<8x32xf32>
    %27 = arith.addf %22, %26 : vector<8x32xf32>
    %28 = math.tanh %27 : vector<8x32xf32>
    %29 = arith.subf %8, %28 : vector<8x32xf32>
    %30 = arith.mulf %21, %29 : vector<8x32xf32>
    %31 = arith.addf %28, %30 : vector<8x32xf32>
    %32 = vector.extract_strided_slice %5 {offsets = [8, 0], sizes = [8, 96], strides = [1, 1]} : vector<64x96xf32> to vector<8x96xf32>
    %33 = arith.truncf %31 : vector<8x32xf32> to vector<8x32xbf16>
    %cst_13 = arith.constant dense<0.000000e+00> : vector<8x96xf32>
    %34 = tpu.matmul %33, %6, %cst_13 {dimension_numbers = #tpu.dot_dimension_numbers<[1], [0], [0], [1], [0, 0, 1, 1], [], []>} : vector<8x32xbf16>, vector<32x96xbf16>, vector<8x96xf32> -> vector<8x96xf32>
    %35 = vector.extract_strided_slice %32 {offsets = [0, 0], sizes = [8, 64], strides = [1, 1]} : vector<8x96xf32> to vector<8x64xf32>
    %36 = vector.extract_strided_slice %34 {offsets = [0, 0], sizes = [8, 64], strides = [1, 1]} : vector<8x96xf32> to vector<8x64xf32>
    %37 = arith.addf %35, %36 : vector<8x64xf32>
    %38 = arith.negf %37 : vector<8x64xf32>
    %39 = math.exp %38 : vector<8x64xf32>
    %cst_14 = arith.constant 1.000000e+00 : f32
    %40 = vector.broadcast %cst_14 : f32 to vector<8x64xf32>
    %41 = arith.addf %40, %39 : vector<8x64xf32>
    %42 = arith.divf %40, %41 : vector<8x64xf32>
    %43 = vector.extract_strided_slice %42 {offsets = [0, 0], sizes = [8, 32], strides = [1, 1]} : vector<8x64xf32> to vector<8x32xf32>
    %44 = vector.extract_strided_slice %42 {offsets = [0, 32], sizes = [8, 32], strides = [1, 1]} : vector<8x64xf32> to vector<8x32xf32>
    %45 = vector.extract_strided_slice %32 {offsets = [0, 64], sizes = [8, 32], strides = [1, 1]} : vector<8x96xf32> to vector<8x32xf32>
    %46 = vector.extract_strided_slice %34 {offsets = [0, 64], sizes = [8, 32], strides = [1, 1]} : vector<8x96xf32> to vector<8x32xf32>
    %47 = vector.broadcast %7 : vector<1x32xf32> to vector<8x32xf32>
    %48 = arith.addf %46, %47 : vector<8x32xf32>
    %49 = arith.mulf %43, %48 : vector<8x32xf32>
    %50 = arith.addf %45, %49 : vector<8x32xf32>
    %51 = math.tanh %50 : vector<8x32xf32>
    %52 = arith.subf %31, %51 : vector<8x32xf32>
    %53 = arith.mulf %44, %52 : vector<8x32xf32>
    %54 = arith.addf %51, %53 : vector<8x32xf32>
    %55 = vector.extract_strided_slice %5 {offsets = [16, 0], sizes = [8, 96], strides = [1, 1]} : vector<64x96xf32> to vector<8x96xf32>
    %56 = arith.truncf %54 : vector<8x32xf32> to vector<8x32xbf16>
    %cst_15 = arith.constant dense<0.000000e+00> : vector<8x96xf32>
    %57 = tpu.matmul %56, %6, %cst_15 {dimension_numbers = #tpu.dot_dimension_numbers<[1], [0], [0], [1], [0, 0, 1, 1], [], []>} : vector<8x32xbf16>, vector<32x96xbf16>, vector<8x96xf32> -> vector<8x96xf32>
    %58 = vector.extract_strided_slice %55 {offsets = [0, 0], sizes = [8, 64], strides = [1, 1]} : vector<8x96xf32> to vector<8x64xf32>
    %59 = vector.extract_strided_slice %57 {offsets = [0, 0], sizes = [8, 64], strides = [1, 1]} : vector<8x96xf32> to vector<8x64xf32>
    %60 = arith.addf %58, %59 : vector<8x64xf32>
    %61 = arith.negf %60 : vector<8x64xf32>
    %62 = math.exp %61 : vector<8x64xf32>
    %cst_16 = arith.constant 1.000000e+00 : f32
    %63 = vector.broadcast %cst_16 : f32 to vector<8x64xf32>
    %64 = arith.addf %63, %62 : vector<8x64xf32>
    %65 = arith.divf %63, %64 : vector<8x64xf32>
    %66 = vector.extract_strided_slice %65 {offsets = [0, 0], sizes = [8, 32], strides = [1, 1]} : vector<8x64xf32> to vector<8x32xf32>
    %67 = vector.extract_strided_slice %65 {offsets = [0, 32], sizes = [8, 32], strides = [1, 1]} : vector<8x64xf32> to vector<8x32xf32>
    %68 = vector.extract_strided_slice %55 {offsets = [0, 64], sizes = [8, 32], strides = [1, 1]} : vector<8x96xf32> to vector<8x32xf32>
    %69 = vector.extract_strided_slice %57 {offsets = [0, 64], sizes = [8, 32], strides = [1, 1]} : vector<8x96xf32> to vector<8x32xf32>
    %70 = vector.broadcast %7 : vector<1x32xf32> to vector<8x32xf32>
    %71 = arith.addf %69, %70 : vector<8x32xf32>
    %72 = arith.mulf %66, %71 : vector<8x32xf32>
    %73 = arith.addf %68, %72 : vector<8x32xf32>
    %74 = math.tanh %73 : vector<8x32xf32>
    %75 = arith.subf %54, %74 : vector<8x32xf32>
    %76 = arith.mulf %67, %75 : vector<8x32xf32>
    %77 = arith.addf %74, %76 : vector<8x32xf32>
    %78 = vector.extract_strided_slice %5 {offsets = [24, 0], sizes = [8, 96], strides = [1, 1]} : vector<64x96xf32> to vector<8x96xf32>
    %79 = arith.truncf %77 : vector<8x32xf32> to vector<8x32xbf16>
    %cst_17 = arith.constant dense<0.000000e+00> : vector<8x96xf32>
    %80 = tpu.matmul %79, %6, %cst_17 {dimension_numbers = #tpu.dot_dimension_numbers<[1], [0], [0], [1], [0, 0, 1, 1], [], []>} : vector<8x32xbf16>, vector<32x96xbf16>, vector<8x96xf32> -> vector<8x96xf32>
    %81 = vector.extract_strided_slice %78 {offsets = [0, 0], sizes = [8, 64], strides = [1, 1]} : vector<8x96xf32> to vector<8x64xf32>
    %82 = vector.extract_strided_slice %80 {offsets = [0, 0], sizes = [8, 64], strides = [1, 1]} : vector<8x96xf32> to vector<8x64xf32>
    %83 = arith.addf %81, %82 : vector<8x64xf32>
    %84 = arith.negf %83 : vector<8x64xf32>
    %85 = math.exp %84 : vector<8x64xf32>
    %cst_18 = arith.constant 1.000000e+00 : f32
    %86 = vector.broadcast %cst_18 : f32 to vector<8x64xf32>
    %87 = arith.addf %86, %85 : vector<8x64xf32>
    %88 = arith.divf %86, %87 : vector<8x64xf32>
    %89 = vector.extract_strided_slice %88 {offsets = [0, 0], sizes = [8, 32], strides = [1, 1]} : vector<8x64xf32> to vector<8x32xf32>
    %90 = vector.extract_strided_slice %88 {offsets = [0, 32], sizes = [8, 32], strides = [1, 1]} : vector<8x64xf32> to vector<8x32xf32>
    %91 = vector.extract_strided_slice %78 {offsets = [0, 64], sizes = [8, 32], strides = [1, 1]} : vector<8x96xf32> to vector<8x32xf32>
    %92 = vector.extract_strided_slice %80 {offsets = [0, 64], sizes = [8, 32], strides = [1, 1]} : vector<8x96xf32> to vector<8x32xf32>
    %93 = vector.broadcast %7 : vector<1x32xf32> to vector<8x32xf32>
    %94 = arith.addf %92, %93 : vector<8x32xf32>
    %95 = arith.mulf %89, %94 : vector<8x32xf32>
    %96 = arith.addf %91, %95 : vector<8x32xf32>
    %97 = math.tanh %96 : vector<8x32xf32>
    %98 = arith.subf %77, %97 : vector<8x32xf32>
    %99 = arith.mulf %90, %98 : vector<8x32xf32>
    %100 = arith.addf %97, %99 : vector<8x32xf32>
    %101 = vector.extract_strided_slice %5 {offsets = [32, 0], sizes = [8, 96], strides = [1, 1]} : vector<64x96xf32> to vector<8x96xf32>
    %102 = arith.truncf %100 : vector<8x32xf32> to vector<8x32xbf16>
    %cst_19 = arith.constant dense<0.000000e+00> : vector<8x96xf32>
    %103 = tpu.matmul %102, %6, %cst_19 {dimension_numbers = #tpu.dot_dimension_numbers<[1], [0], [0], [1], [0, 0, 1, 1], [], []>} : vector<8x32xbf16>, vector<32x96xbf16>, vector<8x96xf32> -> vector<8x96xf32>
    %104 = vector.extract_strided_slice %101 {offsets = [0, 0], sizes = [8, 64], strides = [1, 1]} : vector<8x96xf32> to vector<8x64xf32>
    %105 = vector.extract_strided_slice %103 {offsets = [0, 0], sizes = [8, 64], strides = [1, 1]} : vector<8x96xf32> to vector<8x64xf32>
    %106 = arith.addf %104, %105 : vector<8x64xf32>
    %107 = arith.negf %106 : vector<8x64xf32>
    %108 = math.exp %107 : vector<8x64xf32>
    %cst_20 = arith.constant 1.000000e+00 : f32
    %109 = vector.broadcast %cst_20 : f32 to vector<8x64xf32>
    %110 = arith.addf %109, %108 : vector<8x64xf32>
    %111 = arith.divf %109, %110 : vector<8x64xf32>
    %112 = vector.extract_strided_slice %111 {offsets = [0, 0], sizes = [8, 32], strides = [1, 1]} : vector<8x64xf32> to vector<8x32xf32>
    %113 = vector.extract_strided_slice %111 {offsets = [0, 32], sizes = [8, 32], strides = [1, 1]} : vector<8x64xf32> to vector<8x32xf32>
    %114 = vector.extract_strided_slice %101 {offsets = [0, 64], sizes = [8, 32], strides = [1, 1]} : vector<8x96xf32> to vector<8x32xf32>
    %115 = vector.extract_strided_slice %103 {offsets = [0, 64], sizes = [8, 32], strides = [1, 1]} : vector<8x96xf32> to vector<8x32xf32>
    %116 = vector.broadcast %7 : vector<1x32xf32> to vector<8x32xf32>
    %117 = arith.addf %115, %116 : vector<8x32xf32>
    %118 = arith.mulf %112, %117 : vector<8x32xf32>
    %119 = arith.addf %114, %118 : vector<8x32xf32>
    %120 = math.tanh %119 : vector<8x32xf32>
    %121 = arith.subf %100, %120 : vector<8x32xf32>
    %122 = arith.mulf %113, %121 : vector<8x32xf32>
    %123 = arith.addf %120, %122 : vector<8x32xf32>
    %124 = vector.extract_strided_slice %5 {offsets = [40, 0], sizes = [8, 96], strides = [1, 1]} : vector<64x96xf32> to vector<8x96xf32>
    %125 = arith.truncf %123 : vector<8x32xf32> to vector<8x32xbf16>
    %cst_21 = arith.constant dense<0.000000e+00> : vector<8x96xf32>
    %126 = tpu.matmul %125, %6, %cst_21 {dimension_numbers = #tpu.dot_dimension_numbers<[1], [0], [0], [1], [0, 0, 1, 1], [], []>} : vector<8x32xbf16>, vector<32x96xbf16>, vector<8x96xf32> -> vector<8x96xf32>
    %127 = vector.extract_strided_slice %124 {offsets = [0, 0], sizes = [8, 64], strides = [1, 1]} : vector<8x96xf32> to vector<8x64xf32>
    %128 = vector.extract_strided_slice %126 {offsets = [0, 0], sizes = [8, 64], strides = [1, 1]} : vector<8x96xf32> to vector<8x64xf32>
    %129 = arith.addf %127, %128 : vector<8x64xf32>
    %130 = arith.negf %129 : vector<8x64xf32>
    %131 = math.exp %130 : vector<8x64xf32>
    %cst_22 = arith.constant 1.000000e+00 : f32
    %132 = vector.broadcast %cst_22 : f32 to vector<8x64xf32>
    %133 = arith.addf %132, %131 : vector<8x64xf32>
    %134 = arith.divf %132, %133 : vector<8x64xf32>
    %135 = vector.extract_strided_slice %134 {offsets = [0, 0], sizes = [8, 32], strides = [1, 1]} : vector<8x64xf32> to vector<8x32xf32>
    %136 = vector.extract_strided_slice %134 {offsets = [0, 32], sizes = [8, 32], strides = [1, 1]} : vector<8x64xf32> to vector<8x32xf32>
    %137 = vector.extract_strided_slice %124 {offsets = [0, 64], sizes = [8, 32], strides = [1, 1]} : vector<8x96xf32> to vector<8x32xf32>
    %138 = vector.extract_strided_slice %126 {offsets = [0, 64], sizes = [8, 32], strides = [1, 1]} : vector<8x96xf32> to vector<8x32xf32>
    %139 = vector.broadcast %7 : vector<1x32xf32> to vector<8x32xf32>
    %140 = arith.addf %138, %139 : vector<8x32xf32>
    %141 = arith.mulf %135, %140 : vector<8x32xf32>
    %142 = arith.addf %137, %141 : vector<8x32xf32>
    %143 = math.tanh %142 : vector<8x32xf32>
    %144 = arith.subf %123, %143 : vector<8x32xf32>
    %145 = arith.mulf %136, %144 : vector<8x32xf32>
    %146 = arith.addf %143, %145 : vector<8x32xf32>
    %147 = vector.extract_strided_slice %5 {offsets = [48, 0], sizes = [8, 96], strides = [1, 1]} : vector<64x96xf32> to vector<8x96xf32>
    %148 = arith.truncf %146 : vector<8x32xf32> to vector<8x32xbf16>
    %cst_23 = arith.constant dense<0.000000e+00> : vector<8x96xf32>
    %149 = tpu.matmul %148, %6, %cst_23 {dimension_numbers = #tpu.dot_dimension_numbers<[1], [0], [0], [1], [0, 0, 1, 1], [], []>} : vector<8x32xbf16>, vector<32x96xbf16>, vector<8x96xf32> -> vector<8x96xf32>
    %150 = vector.extract_strided_slice %147 {offsets = [0, 0], sizes = [8, 64], strides = [1, 1]} : vector<8x96xf32> to vector<8x64xf32>
    %151 = vector.extract_strided_slice %149 {offsets = [0, 0], sizes = [8, 64], strides = [1, 1]} : vector<8x96xf32> to vector<8x64xf32>
    %152 = arith.addf %150, %151 : vector<8x64xf32>
    %153 = arith.negf %152 : vector<8x64xf32>
    %154 = math.exp %153 : vector<8x64xf32>
    %cst_24 = arith.constant 1.000000e+00 : f32
    %155 = vector.broadcast %cst_24 : f32 to vector<8x64xf32>
    %156 = arith.addf %155, %154 : vector<8x64xf32>
    %157 = arith.divf %155, %156 : vector<8x64xf32>
    %158 = vector.extract_strided_slice %157 {offsets = [0, 0], sizes = [8, 32], strides = [1, 1]} : vector<8x64xf32> to vector<8x32xf32>
    %159 = vector.extract_strided_slice %157 {offsets = [0, 32], sizes = [8, 32], strides = [1, 1]} : vector<8x64xf32> to vector<8x32xf32>
    %160 = vector.extract_strided_slice %147 {offsets = [0, 64], sizes = [8, 32], strides = [1, 1]} : vector<8x96xf32> to vector<8x32xf32>
    %161 = vector.extract_strided_slice %149 {offsets = [0, 64], sizes = [8, 32], strides = [1, 1]} : vector<8x96xf32> to vector<8x32xf32>
    %162 = vector.broadcast %7 : vector<1x32xf32> to vector<8x32xf32>
    %163 = arith.addf %161, %162 : vector<8x32xf32>
    %164 = arith.mulf %158, %163 : vector<8x32xf32>
    %165 = arith.addf %160, %164 : vector<8x32xf32>
    %166 = math.tanh %165 : vector<8x32xf32>
    %167 = arith.subf %146, %166 : vector<8x32xf32>
    %168 = arith.mulf %159, %167 : vector<8x32xf32>
    %169 = arith.addf %166, %168 : vector<8x32xf32>
    %170 = vector.extract_strided_slice %5 {offsets = [56, 0], sizes = [8, 96], strides = [1, 1]} : vector<64x96xf32> to vector<8x96xf32>
    %171 = arith.truncf %169 : vector<8x32xf32> to vector<8x32xbf16>
    %cst_25 = arith.constant dense<0.000000e+00> : vector<8x96xf32>
    %172 = tpu.matmul %171, %6, %cst_25 {dimension_numbers = #tpu.dot_dimension_numbers<[1], [0], [0], [1], [0, 0, 1, 1], [], []>} : vector<8x32xbf16>, vector<32x96xbf16>, vector<8x96xf32> -> vector<8x96xf32>
    %173 = vector.extract_strided_slice %170 {offsets = [0, 0], sizes = [8, 64], strides = [1, 1]} : vector<8x96xf32> to vector<8x64xf32>
    %174 = vector.extract_strided_slice %172 {offsets = [0, 0], sizes = [8, 64], strides = [1, 1]} : vector<8x96xf32> to vector<8x64xf32>
    %175 = arith.addf %173, %174 : vector<8x64xf32>
    %176 = arith.negf %175 : vector<8x64xf32>
    %177 = math.exp %176 : vector<8x64xf32>
    %cst_26 = arith.constant 1.000000e+00 : f32
    %178 = vector.broadcast %cst_26 : f32 to vector<8x64xf32>
    %179 = arith.addf %178, %177 : vector<8x64xf32>
    %180 = arith.divf %178, %179 : vector<8x64xf32>
    %181 = vector.extract_strided_slice %180 {offsets = [0, 0], sizes = [8, 32], strides = [1, 1]} : vector<8x64xf32> to vector<8x32xf32>
    %182 = vector.extract_strided_slice %180 {offsets = [0, 32], sizes = [8, 32], strides = [1, 1]} : vector<8x64xf32> to vector<8x32xf32>
    %183 = vector.extract_strided_slice %170 {offsets = [0, 64], sizes = [8, 32], strides = [1, 1]} : vector<8x96xf32> to vector<8x32xf32>
    %184 = vector.extract_strided_slice %172 {offsets = [0, 64], sizes = [8, 32], strides = [1, 1]} : vector<8x96xf32> to vector<8x32xf32>
    %185 = vector.broadcast %7 : vector<1x32xf32> to vector<8x32xf32>
    %186 = arith.addf %184, %185 : vector<8x32xf32>
    %187 = arith.mulf %181, %186 : vector<8x32xf32>
    %188 = arith.addf %183, %187 : vector<8x32xf32>
    %189 = math.tanh %188 : vector<8x32xf32>
    %190 = arith.subf %169, %189 : vector<8x32xf32>
    %191 = arith.mulf %182, %190 : vector<8x32xf32>
    %192 = arith.addf %189, %191 : vector<8x32xf32>
    %c0_27 = arith.constant 0 : index
    %c0_28 = arith.constant 0 : index
    %193 = vector.load %arg9[%c0_27, %c0_28] : memref<8x32xf32, #tpu.memory_space<vmem>>, vector<8x32xf32>
    tpu.vector_store %arg9[%c0_27, %c0_28], %192 {strides = array<i32>} : memref<8x32xf32, #tpu.memory_space<vmem>>, vector<8x32xf32>,
    %194 = arith.truncf %192 : vector<8x32xf32> to vector<8x32xbf16>
    %c0_29 = arith.constant 0 : index
    %c0_30 = arith.constant 0 : index
    %195 = vector.load %arg6[%c0_29, %c0_30] : memref<32x16xbf16, #tpu.memory_space<vmem>>, vector<32x16xbf16>
    %cst_31 = arith.constant dense<0.000000e+00> : vector<8x16xf32>
    %196 = tpu.matmul %194, %195, %cst_31 {dimension_numbers = #tpu.dot_dimension_numbers<[1], [0], [0], [1], [0, 0, 1, 1], [], []>} : vector<8x32xbf16>, vector<32x16xbf16>, vector<8x16xf32> -> vector<8x16xf32>
    %c0_32 = arith.constant 0 : index
    %c0_33 = arith.constant 0 : index
    %197 = vector.load %arg7[%c0_32, %c0_33] : memref<1x16xf32, #tpu.memory_space<vmem>>, vector<1x16xf32>
    %198 = vector.broadcast %197 : vector<1x16xf32> to vector<8x16xf32>
    %199 = arith.addf %196, %198 : vector<8x16xf32>
    %c0_34 = arith.constant 0 : index
    %c0_35 = arith.constant 0 : index
    %200 = vector.load %arg8[%c0_34, %c0_35] : memref<8x16xf32, #tpu.memory_space<vmem>>, vector<8x16xf32>
    tpu.vector_store %arg8[%c0_34, %c0_35], %199 {strides = array<i32>} : memref<8x16xf32, #tpu.memory_space<vmem>>, vector<8x16xf32>,
    return
  }
}

</mosaic_0001>

<bundles_post_ra>
// kernel: tpu_custom_call.1
= control target key start
LH: loop header
LB: loop body
LE: loop exit
PB: predicated region body
PF: predicated region fallthrough
CT: control target
= control target key end

     0   :  { %15 = vsyncpa [#allocation3], 0  ;;  %v1162_v1 = vmov 0.0   ;;  %vm77_vm0 = vcmask 130048   ;;  %vm1163_vm1 = vmmov 0   ;;  %vm174_vm2 = vcmask 261120   ;;  %s1434_s0 = inlined_call_operand.vmem [shape: bf16[64,16], index: 0, kind: input, shape index: {}]   ;;  %s1435_s1 = inlined_call_operand.vmem [shape: f32[8,32], index: 1, kind: input, shape index: {}]   ;;  %s1436_s2 = inlined_call_operand.vmem [shape: bf16[16,96], index: 2, kind: input, shape index: {}]   ;;  %s1437_s3 = inlined_call_operand.vmem [shape: bf16[32,96], index: 3, kind: input, shape index: {}]   ;;  %s1438_s4 = inlined_call_operand.vmem [shape: f32[1,96], index: 4, kind: input, shape index: {}]   ;;  %s1439_s5 = inlined_call_operand.vmem [shape: f32[1,32], index: 5, kind: input, shape index: {}]   ;;  %s1440_s6 = inlined_call_operand.vmem [shape: bf16[32,16], index: 6, kind: input, shape index: {}]   ;;  %s1441_s7 = inlined_call_operand.vmem [shape: f32[1,16], index: 7, kind: input, shape index: {}]   ;;  %s1442_s8 = inlined_call_operand.hbm [shape: f32[8,16], index: 8, kind: output, shape index: {0}]   ;;  %s1443_s9 = inlined_call_operand.hbm [shape: f32[8,32], index: 9, kind: output, shape index: {1}]  }
   0x1   :  { %v1057_v0 = vld [vmem:[%s1436_s2] sm:$0xff]   ;;  %978 = vmatprep.subr.bf16.mxu1 %v1162_v1  ;;  %v1060_v4 = vld [vmem:[%s1434_s0 + $0x8] sm:$0xff]   ;;  %982 = vmatprep.mubr.msk.bf16.mxu1 %vm1163_vm1, %v1162_v1 }
   0x2   :  { %v1226_v2 = vld [vmem:[%s1437_s3] sm:$0xff]   ;;  %968 = vmatprep.subr.bf16.mxu0 %v1057_v0  ;;  %v1240_v5 = vld [vmem:[%s1437_s3 + $0x8] sm:$0xff]   ;;  %s1164_s3 = smov 64  }
   0x3   :  { %v1059_v3 = vld [vmem:[%s1434_s0] sm:$0xff]   ;;  %979 = vmatpush3.bf16.msra.mxu1 %v1226_v2  ;;  %969 = vmatpush3.bf16.msra.mxu0 %v1057_v0 }
   0x4   :  { %970 = vmatprep.mubr.msk.bf16.mxu0 %vm77_vm0, %v1059_v3  ;;  %980 = vmatprep.subr.bf16.mxu1 %v1162_v1  ;;  %v160_v6 = vld [vmem:[%s1435_s1] sm:$0xff] }
   0x5   :  { %v917_v7 = vld [vmem:[%s1439_s5] ss:$0 sm:$0xff]  ;;  %994 = vmatprep.subr.bf16.mxu0 %v1162_v1  ;;  %v161_v8 = vpack.c.bf16 %v160_v6, %v160_v6 }
   0x6   :  { %971 = vmatmul.mubr.msk.bf16.vlgmr.msra.gmra.mrb[0].mxu0 %vm77_vm0, %v1060_v4  ;;  %230 = vrot.lane.b32.xlu0 %v917_v7, %s1164_s3 }
   0x7   :  { %981 = vmatpush3.bf16.msra.mxu1 %v1240_v5  ;;  %995 = vmatpush3.bf16.msra.mxu0 %v1226_v2 }
   0x8   :  { %986 = vmatprep.subr.bf16.mxu1 %v1162_v1  ;;  %996 = vmatprep.subr.bf16.mxu0 %v1162_v1 }
   0x9   :  { %16 = vsyncpa [#allocation5], 0  ;;  %v1277_v19 = vld [vmem:[%s1438_s4] ss:$0 sm:$0xff]  ;;  %s1165_s4 = smov 32   ;;  %s1166_s22 = smov 96  }
   0xa   :  { %983 = vmatmul.mubr.msk.bf16.vlgmr.msra.gmra.mrb[0].mxu1 %vm174_vm2, %v161_v8  ;;  %v1062_v56 = vld [vmem:[%s1434_s0 + $0x10] sm:$0xff]   ;;  %v1063_v57 = vld [vmem:[%s1434_s0 + $0x18] sm:$0xff]  }
   0xb   :  { %987 = vmatpush3.bf16.msra.mxu1 %v1226_v2  ;;  %990 = vmatprep.mubr.msk.bf16.mxu1 %vm1163_vm1, %v1162_v1 }
   0xc   :  { %988 = vmatprep.subr.bf16.mxu1 %v1162_v1  ;;  %997 = vmatpush3.bf16.msra.mxu0 %v1240_v5 }
   0xd   :  { %1010 = vmatprep.subr.bf16.mxu0 %v1162_v1  ;;  %974 = vmatprep.mubr.msk.bf16.mxu0 %vm77_vm0, %v1062_v56 }
   0xe   :  { %975 = vmatmul.mubr.msk.bf16.gmra.mrb[4].mxu0 %vm77_vm0, %v1063_v57 }
   0xf   :  { %989 = vmatpush3.bf16.msra.mxu1 %v1240_v5  ;;  %998 = vmatprep.mubr.msk.bf16.mxu0 %vm1163_vm1, %v1162_v1 }
  0x10   :  { %1002 = vmatprep.subr.bf16.mxu1 %v1162_v1 }
  0x78   :  { %v1268_v11 = vpop.permute.xlu0 %230 }
  0xd9   :  { %v1266_v9 = vpop.f32.mrb[0].mxu0 }
  0xda   :  { %v124_v10 = vpop.f32.mrb[1].mxu0 }
  0xdb   :  { %v1270_v12 = vpop.f32.mrb[2].mxu0  ;;  %v125_v20 = vadd.f32 %v1277_v19, %v124_v10 }
  0xdc   :  { %v127_v13 = vpop.f32.mrb[3].mxu0 }
  0xdd   :  { %v212_v14 = vpop.f32.mrb[0].mxu1  ;;  %v128_v44 = vadd.f32 %v1277_v19, %v127_v13 }
  0xde   :  { %v233_v15 = vadd.f32 %v1268_v11, %v212_v14  ;;  %v984_v16 = vpop.f32.mrb[1].mxu1  ;;  %v218_v21 = vadd.f32 %v212_v14, %v125_v20 }
  0xdf   :  { %v215_v17 = vpop.f32.mrb[2].mxu1 }
  0xe0   :  { %235 = vrot.lane.b32.xlu0 %v233_v15, %s1164_s3  ;;  %v985_v18 = vpop.f32.mrb[3].mxu1  ;;  %v916_v22 = vmul.f32 -1.442695, %v218_v21  ;;  %v133_v15 = vadd.f32 %v1266_v9, %v1277_v19 }
  0xe1   :  { %v1309_v63 = vpop.f32.mrb[4].mxu0 }
  0xe2   :  { %1066 = vpow2.f32 %v916_v22  ;;  %v1311_v0 = vpop.f32.mrb[5].mxu0 }
  0xe3   :  { %v1313_v3 = vpop.f32.mrb[6].mxu0 }
  0xe4   :  { %v1315_v4 = vpop.f32.mrb[7].mxu0 }
  0xec   :  { %v1067_v23 = vpop.eup %1066 }
  0xed   :  { %v222_v24 = vadd.f32 1.0, %v1067_v23 }
  0xef   :  { %1068 = vrcp.f32 %v222_v24 }
  0xf9   :  { %v1069_v25 = vpop.eup %1068 }
 0x152   :  { %v236_v26 = vpop.permute.xlu0 %235 }
 0x153   :  { %v238_v27 = vmul.f32 %v1069_v25, %v236_v26 }
 0x155   :  { %240 = vrot.lane.b32.xlu1 %v238_v27, %s1164_s3 }
 0x1c7   :  { %v241_v28 = vpop.permute.xlu1 %240 }
 0x1c8   :  { %v243_v29 = vadd.f32 %v241_v28, %v125_v20 }
 0x1ca   :  { %1070 = vtanh.f32 %v243_v29 }
 0x1d4   :  { %v1071_v30 = vpop.eup %1070 }
 0x1d5   :  { %246 = vrot.lane.b32.xlu1 %v1071_v30, %s1164_s3 }
 0x247   :  { %v247_v31 = vpop.permute.xlu1 %246 }
 0x248   :  { %v249_v32 = vsub.f32 %v160_v6, %v247_v31 }
 0x24a   :  { %251 = vrot.lane.b32.xlu0 %v249_v32, %s1165_s4 }
 0x2bc   :  { %v252_v33 = vpop.permute.xlu0 %251 }
 0x2bd   :  { %v254_v34 = vmul.f32 %v1069_v25, %v252_v33 }
 0x2bf   :  { %256 = vrot.lane.b32.xlu1 %v254_v34, %s1165_s4 }
 0x331   :  { %v257_v35 = vpop.permute.xlu1 %256 }
 0x332   :  { %v259_v36 = vadd.f32 %v1071_v30, %v257_v35 }
 0x334   :  { %v260_v37 = vpack.c.bf16 %v259_v36, %v259_v36 }
 0x336   :  { %262 = vrot.lane.b32.xlu0 %v260_v37, %s1164_s3 }
 0x3a8   :  { %v263_v38 = vpop.permute.xlu0 %262 }
 0x3a9   :  { %991 = vmatmul.mubr.msk.bf16.vlgmr.msra.gmra.mrb[4].mxu1 %vm174_vm2, %v263_v38  ;;  %v136_v38 = vadd.f32 %v1270_v12, %v1277_v19 }
 0x3aa   :  { %1003 = vmatpush3.bf16.msra.mxu1 %v1226_v2  ;;  %1006 = vmatprep.mubr.msk.bf16.mxu1 %vm1163_vm1, %v1162_v1 }
 0x3ab   :  { %1004 = vmatprep.subr.bf16.mxu1 %v1162_v1 }
 0x3ae   :  { %1005 = vmatpush3.bf16.msra.mxu1 %v1240_v5 }
 0x3af   :  { %1018 = vmatprep.subr.bf16.mxu1 %v1162_v1 }
 0x47c   :  { %v301_v39 = vpop.f32.mrb[4].mxu1 }
 0x47d   :  { %v314_v40 = vadd.f32 %v301_v39, %v1268_v11  ;;  %v992_v41 = vpop.f32.mrb[5].mxu1  ;;  %v307_v45 = vadd.f32 %v301_v39, %v128_v44 }
 0x47e   :  { %v304_v42 = vpop.f32.mrb[6].mxu1 }
 0x47f   :  { %316 = vrot.lane.b32.xlu1 %v314_v40, %s1164_s3  ;;  %v993_v43 = vpop.f32.mrb[7].mxu1  ;;  %v919_v46 = vmul.f32 -1.442695, %v307_v45 }
 0x481   :  { %1072 = vpow2.f32 %v919_v46 }
 0x48b   :  { %v1073_v47 = vpop.eup %1072 }
 0x48c   :  { %v311_v48 = vadd.f32 1.0, %v1073_v47 }
 0x48e   :  { %1074 = vrcp.f32 %v311_v48 }
 0x498   :  { %v1075_v49 = vpop.eup %1074 }
 0x4f1   :  { %v317_v50 = vpop.permute.xlu1 %316 }
 0x4f2   :  { %v319_v51 = vmul.f32 %v1075_v49, %v317_v50 }
 0x4f4   :  { %321 = vrot.lane.b32.xlu0 %v319_v51, %s1164_s3 }
 0x566   :  { %v322_v52 = vpop.permute.xlu0 %321 }
 0x567   :  { %v324_v53 = vadd.f32 %v322_v52, %v128_v44 }
 0x569   :  { %1076 = vtanh.f32 %v324_v53 }
 0x573   :  { %v1077_v54 = vpop.eup %1076 }
 0x574   :  { %v326_v55 = vsub.f32 %v259_v36, %v1077_v54 }
 0x576   :  { %328 = vrot.lane.b32.xlu1 %v326_v55, %s1166_s22 }
 0x5e8   :  { %v329_v58 = vpop.permute.xlu1 %328 }
 0x5e9   :  { %v331_v59 = vmul.f32 %v1075_v49, %v329_v58 }
 0x5eb   :  { %333 = vrot.lane.b32.xlu0 %v331_v59, %s1165_s4 }
 0x65d   :  { %v334_v60 = vpop.permute.xlu0 %333 }
 0x65e   :  { %v336_v61 = vadd.f32 %v1077_v54, %v334_v60  ;;  %v141_v60 = vadd.f32 %v1277_v19, %v1311_v0 }
 0x660   :  { %v337_v62 = vpack.c.bf16 %v336_v61, %v336_v61 }
 0x662   :  { %339 = vrot.lane.b32.xlu1 %v337_v62, %s1164_s3 }
 0x6d4   :  { %v340_v6 = vpop.permute.xlu1 %339 }
 0x6d5   :  { %999 = vmatmul.mubr.msk.bf16.vlgmr.msra.gmra.mrb[8].mxu0 %vm174_vm2, %v340_v6 }
 0x6d6   :  { %1011 = vmatpush3.bf16.msra.mxu0 %v1226_v2  ;;  %1014 = vmatprep.mubr.msk.bf16.mxu0 %vm1163_vm1, %v1162_v1 }
 0x6d7   :  { %1012 = vmatprep.subr.bf16.mxu0 %v1162_v1 }
 0x6da   :  { %1013 = vmatpush3.bf16.msra.mxu0 %v1240_v5 }
 0x6db   :  { %1026 = vmatprep.subr.bf16.mxu0 %v1162_v1 }
 0x7a8   :  { %v378_v7 = vpop.f32.mrb[8].mxu0 }
 0x7a9   :  { %v391_v8 = vadd.f32 %v378_v7, %v1268_v11  ;;  %v1000_v10 = vpop.f32.mrb[9].mxu0  ;;  %v384_v16 = vadd.f32 %v378_v7, %v133_v15 }
 0x7aa   :  { %v381_v13 = vpop.f32.mrb[10].mxu0 }
 0x7ab   :  { %393 = vrot.lane.b32.xlu0 %v391_v8, %s1164_s3  ;;  %v1001_v14 = vpop.f32.mrb[11].mxu0  ;;  %v921_v17 = vmul.f32 -1.442695, %v384_v16 }
 0x7ad   :  { %1078 = vpow2.f32 %v921_v17 }
 0x7b7   :  { %v1079_v18 = vpop.eup %1078 }
 0x7b8   :  { %v388_v20 = vadd.f32 1.0, %v1079_v18 }
 0x7ba   :  { %1080 = vrcp.f32 %v388_v20 }
 0x7c4   :  { %v1081_v21 = vpop.eup %1080 }
 0x81d   :  { %v394_v22 = vpop.permute.xlu0 %393 }
 0x81e   :  { %v396_v23 = vmul.f32 %v1081_v21, %v394_v22 }
 0x820   :  { %398 = vrot.lane.b32.xlu1 %v396_v23, %s1164_s3 }
 0x892   :  { %v399_v24 = vpop.permute.xlu1 %398 }
 0x893   :  { %v401_v25 = vadd.f32 %v399_v24, %v133_v15 }
 0x895   :  { %1082 = vtanh.f32 %v401_v25 }
 0x89f   :  { %v1083_v26 = vpop.eup %1082 }
 0x8a0   :  { %v403_v27 = vsub.f32 %v336_v61, %v1083_v26 }
 0x8a2   :  { %405 = vrot.lane.b32.xlu0 %v403_v27, %s1166_s22 }
 0x914   :  { %v406_v28 = vpop.permute.xlu0 %405 }
 0x915   :  { %v408_v9 = vmul.f32 %v1081_v21, %v406_v28 }
 0x917   :  { %410 = vrot.lane.b32.xlu1 %v408_v9, %s1165_s4  ;;  %v144_v9 = vadd.f32 %v1277_v19, %v1315_v4 }
 0x989   :  { %v411_v29 = vpop.permute.xlu1 %410 }
 0x98a   :  { %v413_v30 = vadd.f32 %v1083_v26, %v411_v29 }
 0x98c   :  { %v414_v31 = vpack.c.bf16 %v413_v30, %v413_v30 }
 0x98e   :  { %416 = vrot.lane.b32.xlu0 %v414_v31, %s1164_s3 }
 0xa00   :  { %v417_v32 = vpop.permute.xlu0 %416 }
 0xa01   :  { %1007 = vmatmul.mubr.msk.bf16.vlgmr.msra.gmra.mrb[8].mxu1 %vm174_vm2, %v417_v32 }
 0xa02   :  { %1019 = vmatpush3.bf16.msra.mxu1 %v1226_v2  ;;  %1022 = vmatprep.mubr.msk.bf16.mxu1 %vm1163_vm1, %v1162_v1 }
 0xa03   :  { %1020 = vmatprep.subr.bf16.mxu1 %v1162_v1 }
 0xa06   :  { %1021 = vmatpush3.bf16.msra.mxu1 %v1240_v5 }
 0xa07   :  { %1034 = vmatprep.subr.bf16.mxu1 %v1162_v1 }
 0xad4   :  { %v455_v33 = vpop.f32.mrb[8].mxu1 }
 0xad5   :  { %v468_v34 = vadd.f32 %v455_v33, %v1268_v11  ;;  %v1008_v35 = vpop.f32.mrb[9].mxu1  ;;  %v461_v39 = vadd.f32 %v455_v33, %v136_v38 }
 0xad6   :  { %v458_v36 = vpop.f32.mrb[10].mxu1 }
 0xad7   :  { %470 = vrot.lane.b32.xlu1 %v468_v34, %s1164_s3  ;;  %v1009_v37 = vpop.f32.mrb[11].mxu1  ;;  %v923_v40 = vmul.f32 -1.442695, %v461_v39 }
 0xad9   :  { %1084 = vpow2.f32 %v923_v40 }
 0xae3   :  { %v1085_v41 = vpop.eup %1084 }
 0xae4   :  { %v465_v42 = vadd.f32 1.0, %v1085_v41 }
 0xae6   :  { %1086 = vrcp.f32 %v465_v42 }
 0xaf0   :  { %v1087_v43 = vpop.eup %1086 }
 0xb49   :  { %v471_v44 = vpop.permute.xlu1 %470 }
 0xb4a   :  { %v473_v45 = vmul.f32 %v1087_v43, %v471_v44 }
 0xb4c   :  { %475 = vrot.lane.b32.xlu0 %v473_v45, %s1164_s3 }
 0xbbe   :  { %v476_v46 = vpop.permute.xlu0 %475 }
 0xbbf   :  { %v478_v47 = vadd.f32 %v476_v46, %v136_v38 }
 0xbc1   :  { %1088 = vtanh.f32 %v478_v47 }
 0xbcb   :  { %v1089_v48 = vpop.eup %1088 }
 0xbcc   :  { %v480_v49 = vsub.f32 %v413_v30, %v1089_v48 }
 0xbce   :  { %482 = vrot.lane.b32.xlu1 %v480_v49, %s1166_s22 }
 0xc40   :  { %v483_v50 = vpop.permute.xlu1 %482 }
 0xc41   :  { %v485_v12 = vmul.f32 %v1087_v43, %v483_v50 }
 0xc43   :  { %487 = vrot.lane.b32.xlu0 %v485_v12, %s1165_s4 }
 0xcb5   :  { %v488_v51 = vpop.permute.xlu0 %487 }
 0xcb6   :  { %v490_v52 = vadd.f32 %v1089_v48, %v488_v51  ;;  %v149_v48 = vadd.f32 %v1309_v63, %v1277_v19 }
 0xcb8   :  { %v491_v53 = vpack.c.bf16 %v490_v52, %v490_v52 }
 0xcba   :  { %493 = vrot.lane.b32.xlu1 %v491_v53, %s1164_s3 }
 0xd2c   :  { %v494_v54 = vpop.permute.xlu1 %493 }
 0xd2d   :  { %1015 = vmatmul.mubr.msk.bf16.vlgmr.msra.gmra.mrb[12].mxu0 %vm174_vm2, %v494_v54 }
 0xd2e   :  { %1027 = vmatpush3.bf16.msra.mxu0 %v1226_v2  ;;  %1030 = vmatprep.mubr.msk.bf16.mxu0 %vm1163_vm1, %v1162_v1 }
 0xd2f   :  { %1028 = vmatprep.subr.bf16.mxu0 %v1162_v1 }
 0xd32   :  { %1029 = vmatpush3.bf16.msra.mxu0 %v1240_v5 }
 0xd33   :  { %1042 = vmatprep.subr.bf16.mxu0 %v1162_v1 }
 0xe00   :  { %v532_v55 = vpop.f32.mrb[12].mxu0 }
 0xe01   :  { %v545_v56 = vadd.f32 %v532_v55, %v1268_v11  ;;  %v1016_v57 = vpop.f32.mrb[13].mxu0  ;;  %v538_v61 = vadd.f32 %v532_v55, %v141_v60 }
 0xe02   :  { %v535_v58 = vpop.f32.mrb[14].mxu0 }
 0xe03   :  { %547 = vrot.lane.b32.xlu0 %v545_v56, %s1164_s3  ;;  %v1017_v59 = vpop.f32.mrb[15].mxu0  ;;  %v925_v62 = vmul.f32 -1.442695, %v538_v61 }
 0xe05   :  { %1090 = vpow2.f32 %v925_v62 }
 0xe0f   :  { %v1091_v6 = vpop.eup %1090 }
 0xe10   :  { %v542_v7 = vadd.f32 1.0, %v1091_v6 }
 0xe12   :  { %1092 = vrcp.f32 %v542_v7 }
 0xe1c   :  { %v1093_v8 = vpop.eup %1092 }
 0xe75   :  { %v548_v10 = vpop.permute.xlu0 %547 }
 0xe76   :  { %v550_v13 = vmul.f32 %v1093_v8, %v548_v10 }
 0xe78   :  { %552 = vrot.lane.b32.xlu1 %v550_v13, %s1164_s3 }
 0xeea   :  { %v553_v14 = vpop.permute.xlu1 %552 }
 0xeeb   :  { %v555_v15 = vadd.f32 %v553_v14, %v141_v60 }
 0xeed   :  { %1094 = vtanh.f32 %v555_v15  ;;  %v152_v15 = vadd.f32 %v1313_v3, %v1277_v19  ;;  %v1064_v19 = vld [vmem:[%s1440_s6] sm:$0xff]   ;;  %v1065_v3 = vld [vmem:[%s1440_s6 + $0x8] sm:$0xff]   ;;  %s1167_s6 = smov [#allocation4]  }
 0xeee   :  { %s891_s30 = sshll.u32 %s1167_s6, 4  ;;  %s892_s30 = int_to_ptr.vmem [resolvable:$true] %s891_s30 }
 0xeef   :  { %s1114_s10 = scalar_lea.vmem %s892_s30, 128  ;;  %p1119_p1 = scmp.lt.s32.totalorder %s892_s30, %s892_s30 }
 0xef0   :  { %p1115_p0 = scmp.ne.s32.totalorder %s892_s30, %s1114_s10  ;;  %p1120_p2 = scmp.lt.s32.totalorder %s1114_s10, %s1114_s10 }
 0xef2   :  { %p1121_p3 = por %p1120_p2, %p1119_p1 }
 0xef4   :  { %p1122_p4 = pnand %p1121_p3, %p1115_p0 }
 0xef7   :  { %v1095_v16 = vpop.eup %1094 }
 0xef8   :  { %v557_v17 = vsub.f32 %v490_v52, %v1095_v16 }
 0xefa   :  { %559 = vrot.lane.b32.xlu0 %v557_v17, %s1166_s22 }
 0xf6c   :  { %v560_v18 = vpop.permute.xlu0 %559 }
 0xf6d   :  { %v562_v0 = vmul.f32 %v1093_v8, %v560_v18 }
 0xf6f   :  { %564 = vrot.lane.b32.xlu1 %v562_v0, %s1165_s4 }
 0xfe1   :  { %v565_v20 = vpop.permute.xlu1 %564 }
 0xfe2   :  { %v567_v21 = vadd.f32 %v1095_v16, %v565_v20 }
 0xfe4   :  { %v568_v22 = vpack.c.bf16 %v567_v21, %v567_v21 }
 0xfe6   :  { %570 = vrot.lane.b32.xlu0 %v568_v22, %s1164_s3 }
0x1058   :  { %v571_v23 = vpop.permute.xlu0 %570 }
0x1059   :  { %1023 = vmatmul.mubr.msk.bf16.vlgmr.msra.gmra.mrb[12].mxu1 %vm174_vm2, %v571_v23 }
0x105a   :  { %1035 = vmatpush3.bf16.msra.mxu1 %v1226_v2  ;;  %1038 = vmatprep.mubr.msk.bf16.mxu1 %vm1163_vm1, %v1162_v1 }
0x105b   :  { %1036 = vmatprep.subr.bf16.mxu1 %v1162_v1 }
0x105e   :  { %1037 = vmatpush3.bf16.msra.mxu1 %v1240_v5 }
0x112c   :  { %v609_v24 = vpop.f32.mrb[12].mxu1 }
0x112d   :  { %v622_v25 = vadd.f32 %v609_v24, %v1268_v11  ;;  %v1024_v26 = vpop.f32.mrb[13].mxu1  ;;  %v615_v29 = vadd.f32 %v609_v24, %v144_v9 }
0x112e   :  { %v612_v27 = vpop.f32.mrb[14].mxu1 }
0x112f   :  { %624 = vrot.lane.b32.xlu1 %v622_v25, %s1164_s3  ;;  %v1025_v28 = vpop.f32.mrb[15].mxu1  ;;  %v927_v2 = vmul.f32 -1.442695, %v615_v29 }
0x1131   :  { %1096 = vpow2.f32 %v927_v2 }
0x113b   :  { %v1097_v30 = vpop.eup %1096 }
0x113c   :  { %v619_v31 = vadd.f32 1.0, %v1097_v30 }
0x113e   :  { %1098 = vrcp.f32 %v619_v31 }
0x1148   :  { %v1099_v32 = vpop.eup %1098 }
0x11a1   :  { %v625_v33 = vpop.permute.xlu1 %624 }
0x11a2   :  { %v627_v5 = vmul.f32 %v1099_v32, %v625_v33 }
0x11a4   :  { %629 = vrot.lane.b32.xlu0 %v627_v5, %s1164_s3 }
0x1216   :  { %v630_v34 = vpop.permute.xlu0 %629 }
0x1217   :  { %v632_v35 = vadd.f32 %v630_v34, %v144_v9 }
0x1219   :  { %1100 = vtanh.f32 %v632_v35 }
0x1223   :  { %v1101_v36 = vpop.eup %1100 }
0x1224   :  { %v634_v37 = vsub.f32 %v567_v21, %v1101_v36 }
0x1226   :  { %636 = vrot.lane.b32.xlu1 %v634_v37, %s1166_s22 }
0x1298   :  { %v637_v38 = vpop.permute.xlu1 %636 }
0x1299   :  { %v639_v4 = vmul.f32 %v1099_v32, %v637_v38 }
0x129b   :  { %641 = vrot.lane.b32.xlu0 %v639_v4, %s1165_s4 }
0x130d   :  { %v642_v39 = vpop.permute.xlu0 %641 }
0x130e   :  { %v644_v40 = vadd.f32 %v1101_v36, %v642_v39 }
0x1310   :  { %v645_v41 = vpack.c.bf16 %v644_v40, %v644_v40 }
0x1312   :  { %647 = vrot.lane.b32.xlu1 %v645_v41, %s1164_s3 }
0x1384   :  { %v648_v42 = vpop.permute.xlu1 %647 }
0x1385   :  { %1031 = vmatmul.mubr.msk.bf16.vlgmr.msra.gmra.mrb[16].mxu0 %vm174_vm2, %v648_v42 }
0x1386   :  { %1046 = vmatprep.mubr.msk.bf16.mxu0 %vm1163_vm1, %v1162_v1  ;;  %1043 = vmatpush3.bf16.msra.mxu0 %v1064_v19 }
0x1387   :  { %1044 = vmatprep.subr.bf16.mxu0 %v1162_v1 }
0x138a   :  { %1045 = vmatpush3.bf16.msra.mxu0 %v1065_v3 }
0x1458   :  { %v686_v43 = vpop.f32.mrb[16].mxu0 }
0x1459   :  { %v699_v44 = vadd.f32 %v686_v43, %v1268_v11  ;;  %v1032_v45 = vpop.f32.mrb[17].mxu0  ;;  %v692_v49 = vadd.f32 %v686_v43, %v149_v48 }
0x145a   :  { %v689_v46 = vpop.f32.mrb[18].mxu0 }
0x145b   :  { %701 = vrot.lane.b32.xlu0 %v699_v44, %s1164_s3  ;;  %v1033_v47 = vpop.f32.mrb[19].mxu0  ;;  %v929_v50 = vmul.f32 -1.442695, %v692_v49 }
0x145d   :  { %1102 = vpow2.f32 %v929_v50 }
0x1467   :  { %v1103_v12 = vpop.eup %1102 }
0x1468   :  { %v696_v51 = vadd.f32 1.0, %v1103_v12 }
0x146a   :  { %1104 = vrcp.f32 %v696_v51 }
0x1474   :  { %v1105_v52 = vpop.eup %1104 }
0x14cd   :  { %v702_v53 = vpop.permute.xlu0 %701 }
0x14ce   :  { %v704_v54 = vmul.f32 %v1105_v52, %v702_v53 }
0x14d0   :  { %706 = vrot.lane.b32.xlu1 %v704_v54, %s1164_s3 }
0x1542   :  { %v707_v55 = vpop.permute.xlu1 %706 }
0x1543   :  { %v709_v56 = vadd.f32 %v707_v55, %v149_v48 }
0x1545   :  { %1106 = vtanh.f32 %v709_v56 }
0x154f   :  { %v1107_v57 = vpop.eup %1106 }
0x1550   :  { %v711_v58 = vsub.f32 %v644_v40, %v1107_v57 }
0x1552   :  { %713 = vrot.lane.b32.xlu0 %v711_v58, %s1166_s22 }
0x15c4   :  { %v714_v59 = vpop.permute.xlu0 %713 }
0x15c5   :  { %v716_v63 = vmul.f32 %v1105_v52, %v714_v59 }
0x15c7   :  { %718 = vrot.lane.b32.xlu1 %v716_v63, %s1165_s4 }
0x1639   :  { %v719_v60 = vpop.permute.xlu1 %718 }
0x163a   :  { %v721_v61 = vadd.f32 %v1107_v57, %v719_v60 }
0x163c   :  { %v722_v62 = vpack.c.bf16 %v721_v61, %v721_v61 }
0x163e   :  { %724 = vrot.lane.b32.xlu0 %v722_v62, %s1164_s3 }
0x16b0   :  { %v725_v6 = vpop.permute.xlu0 %724 }
0x16b1   :  { %1039 = vmatmul.mubr.msk.bf16.vlgmr.msra.gmra.mrb[16].mxu1 %vm174_vm2, %v725_v6 }
0x1784   :  { %v763_v7 = vpop.f32.mrb[16].mxu1 }
0x1785   :  { %v776_v8 = vadd.f32 %v763_v7, %v1268_v11  ;;  %v1040_v10 = vpop.f32.mrb[17].mxu1  ;;  %v769_v16 = vadd.f32 %v763_v7, %v152_v15 }
0x1786   :  { %v766_v13 = vpop.f32.mrb[18].mxu1 }
0x1787   :  { %778 = vrot.lane.b32.xlu1 %v776_v8, %s1164_s3  ;;  %v1041_v14 = vpop.f32.mrb[19].mxu1  ;;  %v931_v17 = vmul.f32 -1.442695, %v769_v16 }
0x1789   :  { %1108 = vpow2.f32 %v931_v17 }
0x1793   :  { %v1109_v18 = vpop.eup %1108 }
0x1794   :  { %v773_v0 = vadd.f32 1.0, %v1109_v18 }
0x1796   :  { %1110 = vrcp.f32 %v773_v0 }
0x17a0   :  { %v1111_v20 = vpop.eup %1110 }
0x17f9   :  { %v779_v21 = vpop.permute.xlu1 %778 }
0x17fa   :  { %v781_v22 = vmul.f32 %v1111_v20, %v779_v21 }
0x17fc   :  { %783 = vrot.lane.b32.xlu0 %v781_v22, %s1164_s3 }
0x186e   :  { %v784_v11 = vpop.permute.xlu0 %783 }
0x186f   :  { %v786_v23 = vadd.f32 %v784_v11, %v152_v15 }
0x1871   :  { %1112 = vtanh.f32 %v786_v23 }
0x187b   :  { %v1113_v24 = vpop.eup %1112 }
0x187c   :  { %v788_v25 = vsub.f32 %v721_v61, %v1113_v24 }
0x187e   :  { %790 = vrot.lane.b32.xlu1 %v788_v25, %s1166_s22 }
0x18f0   :  { %v791_v26 = vpop.permute.xlu1 %790 }
0x18f1   :  { %v793_v27 = vmul.f32 %v1111_v20, %v791_v26 }
0x18f3   :  { %795 = vrot.lane.b32.xlu0 %v793_v27, %s1165_s4 }
0x1965   :  { %v796_v28 = vpop.permute.xlu0 %795 }
0x1966   :  { %v798_v9 = vadd.f32 %v1113_v24, %v796_v28 }
0x1968   :  { %v804_v29 = vpack.c.bf16 %v798_v9, %v798_v9  ;;  %800 = vrot.lane.b32.xlu0 %v798_v9, %s1164_s3 }
0x196a   :  { %817 = vrot.lane.b32.xlu1 %v804_v29, %s1164_s3 }
0x19da   :  { %v801_v2 = vpop.permute.xlu0 %800 }
0x19db   :  { %803 = vst.msk [vmem:[#allocation4] sm:$0xff] %vm174_vm2, %v801_v2 }
0x19dc   :  { %v818_v30 = vpop.permute.xlu1 %817 }
0x19dd   :  { %1047 = vmatmul.mubr.msk.bf16.vlgmr.msra.gmra.mrb[20].mxu0 %vm174_vm2, %v818_v30 }
0x19de   :  { %1125 = shalt.err (!%p1122_p4)
}
0x19df   :  { %s1126_s13 = scalar_lea.hbm %s1443_s9, 128 }
0x19e0   :  { %p1127_p5 = scmp.ne.s32.totalorder %s1443_s9, %s1126_s13  ;;  %p1130_p6 = scmp.lt.u32.totalorder %s1126_s13, %s1443_s9 }
0x19e2   :  { %p1132_p7 = pnand %p1130_p6, %p1127_p5 }
0x19e4   :  { %1135 = shalt.err (!%p1132_p7)
}
0x19e5   :  { %894 = dma.vmem_to_hbm [thread:$0]  %s892_s30, 128, %s1443_s9, [#allocation5]   ;;  %v932_v1 = vld [vmem:[%s1441_s7] ss:$0 sm:$0xff] }
0x19e6   :  { %s1168_s21 = smov [#allocation2]  }
0x19e7   :  { %s881_s3 = sshll.u32 %s1168_s21, 4  ;;  %s882_s3 = int_to_ptr.vmem [resolvable:$true] %s881_s3 }
0x19e8   :  { %s1136_s1 = scalar_lea.vmem %s882_s3, 128  ;;  %p1141_p9 = scmp.lt.s32.totalorder %s882_s3, %s882_s3 }
0x19e9   :  { %p1137_p8 = scmp.ne.s32.totalorder %s882_s3, %s1136_s1  ;;  %p1142_p10 = scmp.lt.s32.totalorder %s1136_s1, %s1136_s1 }
0x19eb   :  { %p1143_p11 = por %p1142_p10, %p1141_p9 }
0x19ed   :  { %p1144_p12 = pnand %p1143_p11, %p1137_p8 }
0x1ab0   :  { %v868_v31 = vpop.f32.mrb[20].mxu0 }
0x1ab1   :  { %v869_v32 = vadd.f32 %v932_v1, %v868_v31  ;;  %v1048_v33 = vpop.f32.mrb[21].mxu0 }
0x1ab2   :  { %v871_v5 = vpop.f32.mrb[22].mxu0 }
0x1ab3   :  { %874 = vst.msk [vmem:[#allocation2] sm:$0xff] %vm77_vm0, %v869_v32  ;;  %v1049_v34 = vpop.f32.mrb[23].mxu0 }
0x1ab4   :  { %1147 = shalt.err (!%p1144_p12)
}
0x1ab5   :  { %s1148_s7 = scalar_lea.hbm %s1442_s8, 128 }
0x1ab6   :  { %p1149_p13 = scmp.ne.s32.totalorder %s1442_s8, %s1148_s7  ;;  %p1152_p0 = scmp.lt.u32.totalorder %s1148_s7, %s1442_s8 }
0x1ab8   :  { %p1154_p1 = pnand %p1152_p0, %p1149_p13 }
0x1aba   :  { %1157 = shalt.err (!%p1154_p1)
}
0x1abb   :  { %884 = dma.vmem_to_hbm [thread:$0]  %s882_s3, 128, %s1442_s8, [#allocation3]  }
0x1abc   :  { %1158 = dma.done.wait [#allocation3], 128  }
0x1abd   :  { %1159 = vsyncadd [#allocation3], 4294967168 }
0x1abe   :  { %1160 = dma.done.wait [#allocation5], 128  }
0x1abf   :  { %1161 = vsyncadd [#allocation5], 4294967168 }
0x1ac0   :  { %901 = vsyncpa [#allocation3], 1 }
0x1ac1   :  { %902 = vsyncpa [#allocation5], 1 }

</bundles_post_ra>
